<compile_context>
chip_gen: v5e
topology: v5e:2x2
jax: 0.10.0
libtpu: 0.0.40
codegen_flags: <defaults>
</compile_context>

<pallas_src>
import functools
import math

import jax
import jax.numpy as jnp
from jax.experimental import pallas as pl
from jax.experimental.pallas import tpu as pltpu


def _round_up(n, m):
    return ((n + m - 1) // m) * m


def _choose_block_batch(batch):
    """Batch tile: 256 rows for big batches (multiple of 128, so it also suits
    v5e's 4x128^2 MXU), otherwise the whole (sublane-aligned) batch."""
    if batch >= 256:
        return 256
    if batch >= 128:
        return 128
    return _round_up(max(batch, 8), 8)


# --------------------------------------------------------------------------
# Kernel
# --------------------------------------------------------------------------
def _fused_mlp_kernel(*refs, num_layers, out_dims):
    """refs = (x, w0, w1, ..., w_{L-1}, b_all, out).

    Computes out = Linear_{L-1}(ReLU(... ReLU(Linear_0(x)) ...)) for one batch
    tile.  Weights / packed biases are full-array VMEM tiles (constant block
    index -> resident across the grid); intermediates stay in vregs.
    """
    x_ref = refs[0]
    w_refs = refs[1:1 + num_layers]
    b_ref = refs[1 + num_layers]
    o_ref = refs[2 + num_layers]

    h = x_ref[...]
    off = 0
    for i in range(num_layers):
        w = w_refs[i][...]
        d = out_dims[i]
        b = b_ref[0, off:off + d]                      # static slice, 128-aligned
        off += d
        y = jnp.dot(h, w, preferred_element_type=jnp.float32)
        y = y + b.astype(jnp.float32)                  # bias-add / ReLU in f32
        if i != num_layers - 1:
            y = jnp.maximum(y, 0.0)
            h = y.astype(w.dtype)                      # back to MXU dtype
        else:
            o_ref[...] = y.astype(o_ref.dtype)


def _vmem_limit_bytes(x, weights, b_all, out_dims, block_batch):
    """Raise the scoped VMEM limit only when the resident working set needs it."""
    est = 0
    for w in weights:
        est += 2 * w.size * w.dtype.itemsize           # double-buffered residency
    est += 2 * b_all.size * b_all.dtype.itemsize
    est += 2 * block_batch * x.shape[1] * x.dtype.itemsize      # input tiles
    est += 2 * block_batch * out_dims[-1] * 4                   # f32 output tiles
    est += 2 * block_batch * max(out_dims) * 4                  # intermediates headroom
    if est <= (12 << 20):
        return None                                    # defaults are fine
    return int(min(int(est * 1.5), 100 << 20))


def fused_mlp_pallas(x, weights, b_all, out_dims, *, block_batch):
    """One pallas_call for the whole MLP, tiled over the batch axis.

    x: (B_padded, Din), weights[i]: (din_p, dout_p), b_all: (1, sum(dout_p)).
    """
    batch_p, din = x.shape
    num_layers = len(weights)
    dout_p = out_dims[-1]
    grid = (batch_p // block_batch,)

    in_specs = [pl.BlockSpec((block_batch, din), lambda i: (i, 0))]
    for w in weights:
        in_specs.append(pl.BlockSpec(w.shape, lambda i: (0, 0)))   # resident
    in_specs.append(pl.BlockSpec(b_all.shape, lambda i: (0, 0)))   # resident
    out_spec = pl.BlockSpec((block_batch, dout_p), lambda i: (i, 0))

    kernel = functools.partial(
        _fused_mlp_kernel, num_layers=num_layers, out_dims=out_dims)

    return pl.pallas_call(
        kernel,
        out_shape=jax.ShapeDtypeStruct((batch_p, dout_p), jnp.float32),
        grid=grid,
        in_specs=in_specs,
        out_specs=out_spec,
        compiler_params=pltpu.CompilerParams(
            dimension_semantics=("parallel",),
            vmem_limit_bytes=_vmem_limit_bytes(
                x, weights, b_all, out_dims, block_batch)),
    )(x, *weights, b_all)


# --------------------------------------------------------------------------
# Forward wrapper
# --------------------------------------------------------------------------
@functools.partial(jax.jit, static_argnames=("out_dims", "action_dim"))
def _forward_impl(weights, b_all, x, *, out_dims, action_dim):
    compute_dtype = weights[0].dtype
    batch = x.shape[0]
    tb = _choose_block_batch(batch)
    batch_p = _round_up(batch, tb)

    xp = x.astype(compute_dtype)
    if batch_p != batch:
        xp = jnp.pad(xp, ((0, batch_p - batch), (0, 0)))

    out_p = fused_mlp_pallas(xp, weights, b_all, out_dims, block_batch=tb)
    # Padded batch rows / padded action columns are discarded here; padded
    # columns are exactly zero (zero W columns + zero bias).
    return out_p[:batch, :action_dim]


def qnetwork_forward(params, x):
    """Equivalent of QNetwork.forward (Linear->ReLU repeated, final Linear)."""
    return _forward_impl(params["weights"], params["b_all"], x,
                         out_dims=params["out_dims"],
                         action_dim=params["action_dim"])


# --------------------------------------------------------------------------
# Init (PyTorch-style uniform +-1/sqrt(fan_in)), pre-padded for the kernel
# --------------------------------------------------------------------------
def init_qnetwork_params(key, state_dim, action_dim, hidden_nodes,
                         dtype=jnp.float32):
    """Weights stored transposed (in_features, out_features) and zero-padded so
    every out-dim (hidden widths and action_dim) is a multiple of 128; biases
    are packed into one (1, sum(out_dims_padded)) array.  Padding is zeros, so
    the math is identical to the unpadded network."""
    dims = [state_dim] + list(hidden_nodes) + [action_dim]
    dims_p = [state_dim] + [_round_up(d, 128) for d in dims[1:]]

    weights, biases = [], []
    for i in range(len(dims) - 1):
        fan_in, fan_out = dims[i], dims[i + 1]
        in_p, out_p = dims_p[i], dims_p[i + 1]
        key, kw, kb = jax.random.split(key, 3)
        bound = 1.0 / math.sqrt(fan_in)
        w = jax.random.uniform(kw, (fan_in, fan_out), jnp.float32,
                               minval=-bound, maxval=bound)
        b = jax.random.uniform(kb, (fan_out,), jnp.float32,
                               minval=-bound, maxval=bound)
        w_p = jnp.zeros((in_p, out_p), jnp.float32).at[:fan_in, :fan_out].set(w)
        b_p = jnp.zeros((1, out_p), jnp.float32).at[0, :fan_out].set(b)
        weights.append(w_p.astype(dtype))
        biases.append(b_p)

    b_all = jnp.concatenate(biases, axis=1).astype(dtype)
    return {
        "weights": tuple(weights),
        "b_all": b_all,
        "out_dims": tuple(dims_p[1:]),
        "action_dim": action_dim,
    }


def qnetwork_reference(params, x):
    """Pure-JAX f32 reference (uses the same padded arrays, then slices)."""
    num_layers = len(params["weights"])
    out_dims = params["out_dims"]
    h = x.astype(jnp.float32)
    off = 0
    for i, w in enumerate(params["weights"]):
        d = out_dims[i]
        b = params["b_all"][:, off:off + d].astype(jnp.float32)
        off += d
        h = h @ w.astype(jnp.float32) + b
        if i != num_layers - 1:
            h = jnp.maximum(h, 0.0)
    return h[:, :params["action_dim"]]


# --------------------------------------------------------------------------
# Self-test
# --------------------------------------------------------------------------
if __name__ == "__main__":
    # Small shapes consistent with the module: state_dim features in,
    # two hidden layers, action_dim Q-values out.
    batch = 2
    state_dim = 8
    hidden_nodes = [32, 32]
    action_dim = 4

    key = jax.random.PRNGKey(0)
    key, kx = jax.random.split(key)
    x = jax.random.normal(kx, (batch, state_dim), jnp.float32)

    # float32 path (tight tolerance)
    params_f32 = init_qnetwork_params(key, state_dim, action_dim, hidden_nodes,
                                      dtype=jnp.float32)
    out = jax.block_until_ready(qnetwork_forward(params_f32, x))
    ref = qnetwork_reference(params_f32, x)
    assert out.shape == (batch, action_dim)
    assert jnp.allclose(out, ref, atol=1e-5, rtol=1e-5)

    # bfloat16 weights/activations (MXU-native), f32 accumulation -> looser tol
    params_bf16 = init_qnetwork_params(key, state_dim, action_dim, hidden_nodes,
                                       dtype=jnp.bfloat16)
    out_bf = jax.block_until_ready(qnetwork_forward(params_bf16, x))
    assert jnp.allclose(out_bf.astype(jnp.float32), ref, atol=5e-2, rtol=5e-2)

    # Larger batch exercises the batch-axis grid (two 256-row blocks) — this is
    # the intended regime for real RL workloads (many states per call).
    key, kx2 = jax.random.split(key)
    xb = jax.random.normal(kx2, (300, state_dim), jnp.float32)
    out_b = jax.block_until_ready(qnetwork_forward(params_f32, xb))
    ref_b = qnetwork_reference(params_f32, xb)
    assert out_b.shape == (300, action_dim)
    assert jnp.allclose(out_b, ref_b, atol=1e-4, rtol=1e-4)

    print("KERNEL_OK")
</pallas_src>

<mosaic_0001>
module attributes {stable_mosaic.version = 11 : i64} {
  func.func @_fused_mlp_kernel(%arg0: i32, %arg1: memref<8x8xf32, #tpu.memory_space<vmem>>, %arg2: memref<8x128xf32, #tpu.memory_space<vmem>>, %arg3: memref<128x128xf32, #tpu.memory_space<vmem>>, %arg4: memref<128x128xf32, #tpu.memory_space<vmem>>, %arg5: memref<1x384xf32, #tpu.memory_space<vmem>>, %arg6: memref<8x128xf32, #tpu.memory_space<vmem>>) attributes {dimension_semantics = [#tpu.dimension_semantics<parallel>], iteration_bounds = array<i64: 1>, scalar_prefetch = 0 : i64, scratch_operands = 0 : i64, tpu.core_type = #tpu.core_type<tc>, window_params = [{transform_indices = @transform_0, window_bounds = array<i64: 8, 8>}, {pipeline_mode = #tpu.pipeline_mode<synchronous>, transform_indices = @transform_1, window_bounds = array<i64: 8, 128>}, {pipeline_mode = #tpu.pipeline_mode<synchronous>, transform_indices = @transform_2, window_bounds = array<i64: 128, 128>}, {pipeline_mode = #tpu.pipeline_mode<synchronous>, transform_indices = @transform_3, window_bounds = array<i64: 128, 128>}, {pipeline_mode = #tpu.pipeline_mode<synchronous>, transform_indices = @transform_4, window_bounds = array<i64: 1, 384>}, {transform_indices = @transform_5, window_bounds = array<i64: 8, 128>}]} {
    %c0 = arith.constant 0 : index
    %c0_0 = arith.constant 0 : index
    %0 = vector.load %arg1[%c0, %c0_0] : memref<8x8xf32, #tpu.memory_space<vmem>>, vector<8x8xf32>
    %c0_1 = arith.constant 0 : index
    %c0_2 = arith.constant 0 : index
    %1 = vector.load %arg2[%c0_1, %c0_2] : memref<8x128xf32, #tpu.memory_space<vmem>>, vector<8x128xf32>
    %c0_3 = arith.constant 0 : index
    %c0_4 = arith.constant 0 : index
    %2 = vector.load %arg5[%c0_3, %c0_4] : memref<1x384xf32, #tpu.memory_space<vmem>>, vector<1x128xf32>
    %3 = vector.shape_cast %2 : vector<1x128xf32> to vector<128xf32>
    %cst = arith.constant dense<0.000000e+00> : vector<8x128xf32>
    %4 = tpu.matmul %0, %1, %cst {dimension_numbers = #tpu.dot_dimension_numbers<[1], [0], [0], [1], [0, 0, 1, 1], [], []>} : vector<8x8xf32>, vector<8x128xf32>, vector<8x128xf32> -> vector<8x128xf32>
    %5 = vector.shape_cast %3 : vector<128xf32> to vector<1x128xf32>
    %6 = vector.broadcast %5 : vector<1x128xf32> to vector<8x128xf32>
    %7 = arith.addf %4, %6 : vector<8x128xf32>
    %cst_5 = arith.constant 0.000000e+00 : f32
    %8 = vector.broadcast %cst_5 : f32 to vector<8x128xf32>
    %9 = arith.maximumf %7, %8 : vector<8x128xf32>
    %c0_6 = arith.constant 0 : index
    %c0_7 = arith.constant 0 : index
    %10 = vector.load %arg3[%c0_6, %c0_7] : memref<128x128xf32, #tpu.memory_space<vmem>>, vector<128x128xf32>
    %c0_8 = arith.constant 0 : index
    %c128 = arith.constant 128 : index
    %11 = vector.load %arg5[%c0_8, %c128] : memref<1x384xf32, #tpu.memory_space<vmem>>, vector<1x128xf32>
    %12 = vector.shape_cast %11 : vector<1x128xf32> to vector<128xf32>
    %cst_9 = arith.constant dense<0.000000e+00> : vector<8x128xf32>
    %13 = tpu.matmul %9, %10, %cst_9 {dimension_numbers = #tpu.dot_dimension_numbers<[1], [0], [0], [1], [0, 0, 1, 1], [], []>} : vector<8x128xf32>, vector<128x128xf32>, vector<8x128xf32> -> vector<8x128xf32>
    %14 = vector.shape_cast %12 : vector<128xf32> to vector<1x128xf32>
    %15 = vector.broadcast %14 : vector<1x128xf32> to vector<8x128xf32>
    %16 = arith.addf %13, %15 : vector<8x128xf32>
    %cst_10 = arith.constant 0.000000e+00 : f32
    %17 = vector.broadcast %cst_10 : f32 to vector<8x128xf32>
    %18 = arith.maximumf %16, %17 : vector<8x128xf32>
    %c0_11 = arith.constant 0 : index
    %c0_12 = arith.constant 0 : index
    %19 = vector.load %arg4[%c0_11, %c0_12] : memref<128x128xf32, #tpu.memory_space<vmem>>, vector<128x128xf32>
    %c0_13 = arith.constant 0 : index
    %c256 = arith.constant 256 : index
    %20 = vector.load %arg5[%c0_13, %c256] : memref<1x384xf32, #tpu.memory_space<vmem>>, vector<1x128xf32>
    %21 = vector.shape_cast %20 : vector<1x128xf32> to vector<128xf32>
    %cst_14 = arith.constant dense<0.000000e+00> : vector<8x128xf32>
    %22 = tpu.matmul %18, %19, %cst_14 {dimension_numbers = #tpu.dot_dimension_numbers<[1], [0], [0], [1], [0, 0, 1, 1], [], []>} : vector<8x128xf32>, vector<128x128xf32>, vector<8x128xf32> -> vector<8x128xf32>
    %23 = vector.shape_cast %21 : vector<128xf32> to vector<1x128xf32>
    %24 = vector.broadcast %23 : vector<1x128xf32> to vector<8x128xf32>
    %25 = arith.addf %22, %24 : vector<8x128xf32>
    %c0_15 = arith.constant 0 : index
    %c0_16 = arith.constant 0 : index
    %26 = vector.load %arg6[%c0_15, %c0_16] : memref<8x128xf32, #tpu.memory_space<vmem>>, vector<8x128xf32>
    tpu.vector_store %arg6[%c0_15, %c0_16], %25 {strides = array<i32>} : memref<8x128xf32, #tpu.memory_space<vmem>>, vector<8x128xf32>,
    return
  }
  func.func @transform_0(%arg0: i32) -> (i32, i32) {
    %c0_i32 = arith.constant 0 : i32
    %c0_i32_0 = arith.constant 0 : i32
    return %arg0, %c0_i32 : i32, i32
  }
  func.func @transform_1(%arg0: i32) -> (i32, i32) {
    %c0_i32 = arith.constant 0 : i32
    %c0_i32_0 = arith.constant 0 : i32
    %c0_i32_1 = arith.constant 0 : i32
    return %c0_i32, %c0_i32_0 : i32, i32
  }
  func.func @transform_2(%arg0: i32) -> (i32, i32) {
    %c0_i32 = arith.constant 0 : i32
    %c0_i32_0 = arith.constant 0 : i32
    %c0_i32_1 = arith.constant 0 : i32
    return %c0_i32, %c0_i32_0 : i32, i32
  }
  func.func @transform_3(%arg0: i32) -> (i32, i32) {
    %c0_i32 = arith.constant 0 : i32
    %c0_i32_0 = arith.constant 0 : i32
    %c0_i32_1 = arith.constant 0 : i32
    return %c0_i32, %c0_i32_0 : i32, i32
  }
  func.func @transform_4(%arg0: i32) -> (i32, i32) {
    %c0_i32 = arith.constant 0 : i32
    %c0_i32_0 = arith.constant 0 : i32
    %c0_i32_1 = arith.constant 0 : i32
    return %c0_i32, %c0_i32_0 : i32, i32
  }
  func.func @transform_5(%arg0: i32) -> (i32, i32) {
    %c0_i32 = arith.constant 0 : i32
    %c0_i32_0 = arith.constant 0 : i32
    return %arg0, %c0_i32 : i32, i32
  }
}

</mosaic_0001>

<bundles_post_ra>
// kernel: _forward_impl.1
= control target key start
LH: loop header
LB: loop body
LE: loop exit
PB: predicated region body
PF: predicated region fallthrough
CT: control target
= control target key end

     0   :  { %10 = vsyncpa [#allocation3], 0  ;;  %s289_s0 = inlined_call_operand.vmem [shape: f32[8,8], index: 0, kind: input, shape index: {}]   ;;  %s290_s1 = inlined_call_operand.vmem [shape: f32[8,128], index: 1, kind: input, shape index: {}]   ;;  %s291_s2 = inlined_call_operand.hbm [shape: f32[128,128], index: 2, kind: input, shape index: {}]   ;;  %s292_s3 = inlined_call_operand.hbm [shape: f32[128,128], index: 3, kind: input, shape index: {}]   ;;  %s293_s4 = inlined_call_operand.vmem [shape: f32[1,384], index: 4, kind: input, shape index: {}]   ;;  %s294_s5 = inlined_call_operand.vmem [shape: f32[8,128], index: 5, kind: output, shape index: {}]  }
   0x1   :  { %s20_s20 = sshll.u32 %s291_s2, 4  ;;  %s21_s20 = int_to_ptr.hbm [resolvable:$true] %s20_s20 }
   0x2   :  { %11 = vsyncpa [#allocation5], 0  ;;  %s231_s21 = smov [#allocation2]   ;;  %s33_s25 = sshll.u32 %s292_s3, 4  ;;  %s34_s25 = int_to_ptr.hbm [resolvable:$true] %s33_s25 }
   0x3   :  { %s22_s22 = sshll.u32 %s231_s21, 4  ;;  %s232_s26 = smov 128   ;;  %s23_s22 = int_to_ptr.vmem [resolvable:$true] %s22_s22 }
   0x4   :  { %s233_s27 = smov 8   ;;  %s234_s28 = smov [#allocation4]  }
   0x5   :  { %28 = dma.hbm_to_vmem [thread:$0]  %s21_s20, 2048, %s23_s22, [#allocation3], %s232_s26, %s232_s26, %s233_s27  }
   0x6   :  { %s35_s29 = sshll.u32 %s234_s28, 4  ;;  %s36_s29 = int_to_ptr.vmem [resolvable:$true] %s35_s29 }
   0x7   :  { %41 = dma.hbm_to_vmem [thread:$0]  %s34_s25, 2048, %s36_s29, [#allocation5], %s232_s26, %s232_s26, %s233_s27  }
   0x8   :  { %227 = dma.done.wait [#allocation3], 2048  }
   0x9   :  { %228 = vsyncadd [#allocation3], 4294965248 }
   0xa   :  { %229 = dma.done.wait [#allocation5], 2048  }
   0xb   :  { %230 = vsyncadd [#allocation5], 4294965248  ;;  %vm58_vm0 = vcmask 64512   ;;  %v53_v0 = vld [vmem:[%s290_s1] sm:$0xff]  ;;  %v98_v2 = vld [vmem:[#allocation2 + $0x78] sm:$0xff] }
   0xc   :  { %v52_v1 = vld [vmem:[%s289_s0] sm:$0xff]  ;;  %77 = vmatpush.msra.mxu0 %v53_v0  ;;  %103 = vmatpush.msra.mxu1 %v98_v2  ;;  %v97_v3 = vld [vmem:[#allocation2 + $0x70] sm:$0xff]  ;;  %v96_v4 = vld [vmem:[#allocation2 + $0x68] sm:$0xff] }
   0xd   :  { %171 = vmatmul.msk.f32.vlgmr.msra.gmra.mxu0 %vm58_vm0, %v52_v1  ;;  %v95_v5 = vld [vmem:[#allocation2 + $0x60] sm:$0xff]  ;;  %v94_v6 = vld [vmem:[#allocation2 + $0x58] sm:$0xff]  ;;  %v93_v7 = vld [vmem:[#allocation2 + $0x50] sm:$0xff] }
   0xe   :  { %104 = vmatpush.msra.mxu1 %v97_v3  ;;  %v92_v8 = vld [vmem:[#allocation2 + $0x48] sm:$0xff]  ;;  %v91_v9 = vld [vmem:[#allocation2 + $0x40] sm:$0xff]  ;;  %v90_v10 = vld [vmem:[#allocation2 + $0x38] sm:$0xff] }
   0xf   :  { %v89_v11 = vld [vmem:[#allocation2 + $0x30] sm:$0xff]  ;;  %v88_v12 = vld [vmem:[#allocation2 + $0x28] sm:$0xff]  ;;  %v87_v13 = vld [vmem:[#allocation2 + $0x20] sm:$0xff] }
  0x10   :  { %105 = vmatpush.msra.mxu1 %v96_v4  ;;  %v86_v14 = vld [vmem:[#allocation2 + $0x18] sm:$0xff]  ;;  %v85_v15 = vld [vmem:[#allocation2 + $0x10] sm:$0xff]  ;;  %v84_v16 = vld [vmem:[#allocation2 + $0x8] sm:$0xff] }
  0x11   :  { %v83_v17 = vld [vmem:[#allocation2] sm:$0xff]  ;;  %v139_v18 = vld [vmem:[#allocation4 + $0x78] sm:$0xff]  ;;  %v138_v19 = vld [vmem:[#allocation4 + $0x70] sm:$0xff] }
  0x12   :  { %106 = vmatpush.msra.mxu1 %v95_v5  ;;  %144 = vmatpush.msra.mxu2 %v139_v18  ;;  %v137_v20 = vld [vmem:[#allocation4 + $0x68] sm:$0xff]  ;;  %v136_v21 = vld [vmem:[#allocation4 + $0x60] sm:$0xff]  ;;  %v135_v22 = vld [vmem:[#allocation4 + $0x58] sm:$0xff] }
  0x13   :  { %v134_v23 = vld [vmem:[#allocation4 + $0x50] sm:$0xff]  ;;  %v133_v24 = vld [vmem:[#allocation4 + $0x48] sm:$0xff]  ;;  %v132_v25 = vld [vmem:[#allocation4 + $0x40] sm:$0xff] }
  0x14   :  { %107 = vmatpush.msra.mxu1 %v94_v6  ;;  %145 = vmatpush.msra.mxu2 %v138_v19  ;;  %v131_v26 = vld [vmem:[#allocation4 + $0x38] sm:$0xff]  ;;  %v130_v27 = vld [vmem:[#allocation4 + $0x30] sm:$0xff]  ;;  %v129_v28 = vld [vmem:[#allocation4 + $0x28] sm:$0xff] }
  0x15   :  { %v128_v29 = vld [vmem:[#allocation4 + $0x20] sm:$0xff]  ;;  %v127_v30 = vld [vmem:[#allocation4 + $0x18] sm:$0xff]  ;;  %v126_v35 = vld [vmem:[#allocation4 + $0x10] sm:$0xff] }
  0x16   :  { %108 = vmatpush.msra.mxu1 %v93_v7  ;;  %146 = vmatpush.msra.mxu2 %v137_v20  ;;  %v176_v31 = vld [vmem:[%s293_s4] ss:$0 sm:$0xff]  ;;  %v125_v36 = vld [vmem:[#allocation4 + $0x8] sm:$0xff]  ;;  %v177_v38 = vld [vmem:[%s293_s4 + $0x1] ss:$0 sm:$0xff] }
  0x17   :  { %v124_v37 = vld [vmem:[#allocation4] sm:$0xff] }
  0x18   :  { %109 = vmatpush.msra.mxu1 %v92_v8  ;;  %147 = vmatpush.msra.mxu2 %v136_v21  ;;  %v178_v42 = vld [vmem:[%s293_s4 + $0x2] ss:$0 sm:$0xff] }
  0x1a   :  { %110 = vmatpush.msra.mxu1 %v91_v9  ;;  %148 = vmatpush.msra.mxu2 %v135_v22 }
  0x1c   :  { %111 = vmatpush.msra.mxu1 %v90_v10  ;;  %149 = vmatpush.msra.mxu2 %v134_v23 }
  0x1e   :  { %112 = vmatpush.msra.mxu1 %v89_v11  ;;  %150 = vmatpush.msra.mxu2 %v133_v24 }
  0x20   :  { %113 = vmatpush.msra.mxu1 %v88_v12  ;;  %151 = vmatpush.msra.mxu2 %v132_v25 }
  0x22   :  { %114 = vmatpush.msra.mxu1 %v87_v13  ;;  %152 = vmatpush.msra.mxu2 %v131_v26 }
  0x24   :  { %115 = vmatpush.msra.mxu1 %v86_v14  ;;  %153 = vmatpush.msra.mxu2 %v130_v27 }
  0x26   :  { %116 = vmatpush.msra.mxu1 %v85_v15  ;;  %154 = vmatpush.msra.mxu2 %v129_v28 }
  0x28   :  { %117 = vmatpush.msra.mxu1 %v84_v16  ;;  %155 = vmatpush.msra.mxu2 %v128_v29 }
  0x2a   :  { %118 = vmatpush.msra.mxu1 %v83_v17  ;;  %156 = vmatpush.msra.mxu2 %v127_v30 }
  0x2c   :  { %157 = vmatpush.msra.mxu2 %v126_v35 }
  0x2e   :  { %158 = vmatpush.msra.mxu2 %v125_v36 }
  0x30   :  { %159 = vmatpush.msra.mxu2 %v124_v37 }
  0x8a   :  { %v79_v32 = vpop.f32.mrf.mxu0 }
  0x8b   :  { %v80_v33 = vadd.f32 %v176_v31, %v79_v32 }
  0x8d   :  { %v82_v34 = vmax.f32 %v80_v33, 0.0 }
  0x8f   :  { %119 = vmatmul.f32.vlgmr.msra.gmra.mxu1 %v82_v34 }
 0x10c   :  { %v120_v39 = vpop.f32.mrf.mxu1 }
 0x10d   :  { %v121_v40 = vadd.f32 %v177_v38, %v120_v39 }
 0x10f   :  { %v123_v41 = vmax.f32 %v121_v40, 0.0 }
 0x111   :  { %160 = vmatmul.f32.vlgmr.msra.gmra.mxu2 %v123_v41 }
 0x194   :  { %v161_v43 = vpop.f32.mrf.mxu2 }
 0x195   :  { %v162_v44 = vadd.f32 %v178_v42, %v161_v43 }
 0x197   :  { %164 = vst [vmem:[%s294_s5] sm:$0xff] %v162_v44 }
 0x198   :  { %169 = vsyncpa [#allocation3], 1 }
 0x199   :  { %170 = vsyncpa [#allocation5], 1 }

</bundles_post_ra>
